<compile_context>
chip_gen: v5e
topology: v5e:2x2
jax: 0.10.0
libtpu: 0.0.40
codegen_flags: <defaults>
</compile_context>

<pallas_src>
import functools

import jax
import jax.numpy as jnp
from jax import lax
from jax.experimental import pallas as pl
from jax.experimental.pallas import tpu as pltpu

EPS = 1e-5
_VMEM_LIMIT_BYTES = 32 * 1024 * 1024


def _round_up(a, b):
    return (a + b - 1) // b * b


# ------------------------------ Pallas kernels ------------------------------


def _conv_stats_kernel(p_ref, w_ref, conv_ref, s1_ref, s2_ref):
    """(Cout, CK) @ (CK, tile_R) on the MXU + per-tile partial BN sums."""
    conv = jnp.dot(w_ref[0], p_ref[0], preferred_element_type=jnp.float32)
    conv_ref[0] = conv                                           # lane-dense store
    s1_ref[0, 0] = jnp.sum(conv, axis=1, keepdims=True)          # (Cout, 1)
    s2_ref[0, 0] = jnp.sum(conv * conv, axis=1, keepdims=True)   # (Cout, 1)


def _bn_relu_kernel(conv_ref, scale_ref, shift_ref, o_ref):
    """Fused BatchNorm (precomputed per-channel scale/shift) + ReLU."""
    y = conv_ref[0] * scale_ref[...] + shift_ref[...]
    o_ref[0] = jnp.maximum(y, 0.0).astype(o_ref.dtype)


# ------------------------------ host-side glue ------------------------------


def _phase_geom(K, s, p, size_out):
    """Per-phase 1D geometry of the sub-pixel (output-phase) decomposition."""
    out = []
    for r in range(s):
        o0 = (r - p) % s                    # first output index in this phase
        n = -(-(size_out - o0) // s)        # number of outputs in this phase
        base = (o0 + p - r) // s            # input index of output 0, tap 0
        m = (K - 1 - r) // s + 1            # number of kernel taps in this phase
        out.append((o0, n, base, m))
    return out


@functools.partial(jax.jit, static_argnames=("stride", "padding", "compute_dtype"))
def transpose_block_forward(x, weight, gamma, beta, *, stride, padding,
                            compute_dtype=jnp.bfloat16):
    """x: (N, Cin, Hi, Wi); weight: (Cin, Cout, K, K) -- PyTorch ConvTranspose2d layout."""
    N, Cin, Hi, Wi = x.shape
    _, Cout, K, _ = weight.shape
    s, p = stride, padding
    assert K >= s, "sub-pixel decomposition here assumes kernel_size >= stride"

    Ho = (Hi - 1) * s - 2 * p + K
    Wo = (Wi - 1) * s - 2 * p + K
    Ks = (K + s - 1) // s                   # max taps per phase (uniform CK)
    CK = Cin * Ks * Ks

    geom_h = _phase_geom(K, s, p, Ho)
    geom_w = _phase_geom(K, s, p, Wo)
    phases = [(rh, rw) for rh in range(s) for rw in range(s)]
    n_ph = len(phases)

    # Row (= lane) tiling: rows of one phase = N * n_h * n_w.
    r_true = [N * geom_h[rh][1] * geom_w[rw][1] for rh, rw in phases]
    r_max = max(r_true)
    tile_r = min(2048, _round_up(r_max, 128))
    r_pad = _round_up(r_max, tile_r)
    n_rt = r_pad // tile_r

    # --- build per-phase dense patches (CK, R) and sub-kernels (Cout, CK) ---
    lpad = K                                 # generous static zero padding
    xp = jnp.pad(x, ((0, 0), (0, 0), (lpad, lpad), (lpad, lpad)))

    patch_list, w_list = [], []
    for rh, rw in phases:
        _, n_h, base_h, m_h = geom_h[rh]
        _, n_w, base_w, m_w = geom_w[rw]
        slabs = []
        for mh in range(Ks):
            for mw in range(Ks):
                h0 = base_h - min(mh, m_h - 1) + lpad
                w0 = base_w - min(mw, m_w - 1) + lpad
                slabs.append(xp[:, :, h0:h0 + n_h, w0:w0 + n_w])
        patch = jnp.stack(slabs, axis=2)                       # (N, Cin, Ks*Ks, n_h, n_w)
        patch = jnp.transpose(patch, (1, 2, 0, 3, 4))          # (Cin, Ks*Ks, N, n_h, n_w)
        patch = patch.reshape(CK, N * n_h * n_w)
        patch = jnp.pad(patch, ((0, 0), (0, r_pad - patch.shape[1])))
        patch_list.append(patch)

        w_ph = jnp.transpose(weight[:, :, rh::s, rw::s], (1, 0, 2, 3))  # (Cout, Cin, m_h, m_w)
        w_ph = jnp.pad(w_ph, ((0, 0), (0, 0), (0, Ks - m_h), (0, Ks - m_w)))
        w_list.append(w_ph.reshape(Cout, CK))

    patches = jnp.stack(patch_list).astype(compute_dtype)      # (n_ph, CK, r_pad)
    w_all = jnp.stack(w_list).astype(compute_dtype)            # (n_ph, Cout, CK)

    cparams = pltpu.CompilerParams(
        dimension_semantics=("parallel", "parallel"),
        vmem_limit_bytes=_VMEM_LIMIT_BYTES)

    # --- pass 1: tiled matmul + per-tile partial BN statistics ---
    conv, s1p, s2p = pl.pallas_call(
        _conv_stats_kernel,
        grid=(n_ph, n_rt),
        in_specs=[
            pl.BlockSpec((1, CK, tile_r), lambda ph, rt: (ph, 0, rt)),
            pl.BlockSpec((1, Cout, CK), lambda ph, rt: (ph, 0, 0)),
        ],
        out_specs=(
            pl.BlockSpec((1, Cout, tile_r), lambda ph, rt: (ph, 0, rt)),
            pl.BlockSpec((1, 1, Cout, 1), lambda ph, rt: (ph, rt, 0, 0)),
            pl.BlockSpec((1, 1, Cout, 1), lambda ph, rt: (ph, rt, 0, 0)),
        ),
        out_shape=(
            jax.ShapeDtypeStruct((n_ph, Cout, r_pad), jnp.float32),
            jax.ShapeDtypeStruct((n_ph, n_rt, Cout, 1), jnp.float32),
            jax.ShapeDtypeStruct((n_ph, n_rt, Cout, 1), jnp.float32),
        ),
        compiler_params=cparams,
    )(patches, w_all)

    # --- finalize global BN statistics (tiny; padded rows contribute zeros) ---
    count = N * Ho * Wo
    sum1 = jnp.sum(s1p, axis=(0, 1, 3))
    sum2 = jnp.sum(s2p, axis=(0, 1, 3))
    mean = sum1 / count
    var = jnp.maximum(sum2 / count - mean * mean, 0.0)
    inv_std = lax.rsqrt(var + EPS)
    scale = (gamma * inv_std).reshape(Cout, 1).astype(jnp.float32)
    shift = (beta - mean * gamma * inv_std).reshape(Cout, 1).astype(jnp.float32)

    # --- pass 2: fused normalize + affine + ReLU (lane-dense, fully parallel) ---
    y2 = pl.pallas_call(
        _bn_relu_kernel,
        grid=(n_ph, n_rt),
        in_specs=[
            pl.BlockSpec((1, Cout, tile_r), lambda ph, rt: (ph, 0, rt)),
            pl.BlockSpec((Cout, 1), lambda ph, rt: (0, 0)),
            pl.BlockSpec((Cout, 1), lambda ph, rt: (0, 0)),
        ],
        out_specs=pl.BlockSpec((1, Cout, tile_r), lambda ph, rt: (ph, 0, rt)),
        out_shape=jax.ShapeDtypeStruct((n_ph, Cout, r_pad), jnp.float32),
        compiler_params=cparams,
    )(conv, scale, shift)

    # --- assemble phases back to NCHW (cheap strided scatter) ---
    out = jnp.zeros((N, Cout, Ho, Wo), jnp.float32)
    for idx, (rh, rw) in enumerate(phases):
        o0h, n_h, _, _ = geom_h[rh]
        o0w, n_w, _, _ = geom_w[rw]
        blk = y2[idx, :, :N * n_h * n_w].reshape(Cout, N, n_h, n_w)
        blk = jnp.transpose(blk, (1, 0, 2, 3))
        out = out.at[:, :, o0h::s, o0w::s].set(blk)
    return out


def _reference(x, weight, gamma, beta, *, stride, padding):
    """Pure-JAX reference (ConvTranspose2d + train-mode BN + ReLU)."""
    Cin, Cout, K, _ = weight.shape
    pad = K - 1 - padding
    w_conv = jnp.transpose(weight, (1, 0, 2, 3))[:, :, ::-1, ::-1]      # (Cout, Cin, K, K)
    conv = lax.conv_general_dilated(
        x, w_conv, window_strides=(1, 1),
        padding=[(pad, pad), (pad, pad)], lhs_dilation=(stride, stride),
        dimension_numbers=("NCHW", "OIHW", "NCHW"))
    mean = conv.mean(axis=(0, 2, 3), keepdims=True)
    var = ((conv - mean) ** 2).mean(axis=(0, 2, 3), keepdims=True)
    y = (conv - mean) * lax.rsqrt(var + EPS)
    y = y * gamma.reshape(1, -1, 1, 1) + beta.reshape(1, -1, 1, 1)
    return jnp.maximum(y, 0.0)


if __name__ == "__main__":
    # TransposeBlock(in_planes=4, out_planes=8, kernel_size=4, stride=2, padding=1)
    in_planes, out_planes, kernel_size, stride, padding = 4, 8, 4, 2, 1

    key = jax.random.PRNGKey(0)
    kx, kw = jax.random.split(key)
    x = jax.random.normal(kx, (2, in_planes, 16, 16), dtype=jnp.float32)
    weight = 0.1 * jax.random.normal(
        kw, (in_planes, out_planes, kernel_size, kernel_size), dtype=jnp.float32)
    gamma = jnp.ones((out_planes,), jnp.float32)   # BatchNorm2d default affine init
    beta = jnp.zeros((out_planes,), jnp.float32)

    ref = _reference(x, weight, gamma, beta, stride=stride, padding=padding)

    # f32 MXU operands: tight check against the pure-JAX reference.
    out_f32 = transpose_block_forward(x, weight, gamma, beta, stride=stride,
                                      padding=padding, compute_dtype=jnp.float32)
    out_f32 = jax.block_until_ready(out_f32)
    assert out_f32.shape == (2, out_planes, 32, 32), out_f32.shape
    assert jnp.allclose(out_f32, ref, atol=5e-4, rtol=5e-4), \
        float(jnp.max(jnp.abs(out_f32 - ref)))

    # bf16 MXU operands (default fast path for v6e/v7x): looser tolerance.
    out_bf16 = transpose_block_forward(x, weight, gamma, beta,
                                       stride=stride, padding=padding)
    out_bf16 = jax.block_until_ready(out_bf16)
    assert out_bf16.shape == (2, out_planes, 32, 32), out_bf16.shape
    assert jnp.allclose(out_bf16, ref, atol=3e-2, rtol=3e-2), \
        float(jnp.max(jnp.abs(out_bf16 - ref)))

    print("KERNEL_OK")
</pallas_src>

<mosaic_0001>
module attributes {stable_mosaic.version = 11 : i64} {
  func.func @_bn_relu_kernel(%arg0: i32, %arg1: i32, %arg2: memref<1x8x512xf32, #tpu.memory_space<vmem>>, %arg3: memref<8x1xf32, #tpu.memory_space<vmem>>, %arg4: memref<8x1xf32, #tpu.memory_space<vmem>>, %arg5: memref<1x8x512xf32, #tpu.memory_space<vmem>>) attributes {dimension_semantics = [#tpu.dimension_semantics<parallel>, #tpu.dimension_semantics<parallel>], iteration_bounds = array<i64: 4, 1>, scalar_prefetch = 0 : i64, scratch_operands = 0 : i64, tpu.core_type = #tpu.core_type<tc>, window_params = [{transform_indices = @transform_0, window_bounds = array<i64: 1, 8, 512>}, {pipeline_mode = #tpu.pipeline_mode<synchronous>, transform_indices = @transform_1, window_bounds = array<i64: 8, 1>}, {pipeline_mode = #tpu.pipeline_mode<synchronous>, transform_indices = @transform_2, window_bounds = array<i64: 8, 1>}, {transform_indices = @transform_3, window_bounds = array<i64: 1, 8, 512>}]} {
    %c0 = arith.constant 0 : index
    %c0_0 = arith.constant 0 : index
    %c0_1 = arith.constant 0 : index
    %0 = vector.load %arg2[%c0, %c0_0, %c0_1] : memref<1x8x512xf32, #tpu.memory_space<vmem>>, vector<1x8x512xf32>
    %1 = vector.shape_cast %0 : vector<1x8x512xf32> to vector<8x512xf32>
    %c0_2 = arith.constant 0 : index
    %c0_3 = arith.constant 0 : index
    %2 = vector.load %arg3[%c0_2, %c0_3] : memref<8x1xf32, #tpu.memory_space<vmem>>, vector<8x1xf32>
    %3 = vector.broadcast %2 : vector<8x1xf32> to vector<8x512xf32>
    %4 = arith.mulf %1, %3 : vector<8x512xf32>
    %c0_4 = arith.constant 0 : index
    %c0_5 = arith.constant 0 : index
    %5 = vector.load %arg4[%c0_4, %c0_5] : memref<8x1xf32, #tpu.memory_space<vmem>>, vector<8x1xf32>
    %6 = vector.broadcast %5 : vector<8x1xf32> to vector<8x512xf32>
    %7 = arith.addf %4, %6 : vector<8x512xf32>
    %cst = arith.constant 0.000000e+00 : f32
    %8 = vector.broadcast %cst : f32 to vector<8x512xf32>
    %9 = arith.maximumf %7, %8 : vector<8x512xf32>
    %c0_6 = arith.constant 0 : index
    %c0_7 = arith.constant 0 : index
    %c0_8 = arith.constant 0 : index
    %10 = vector.load %arg5[%c0_6, %c0_7, %c0_8] : memref<1x8x512xf32, #tpu.memory_space<vmem>>, vector<1x8x512xf32>
    %11 = vector.shape_cast %10 : vector<1x8x512xf32> to vector<8x512xf32>
    %12 = vector.shape_cast %9 : vector<8x512xf32> to vector<1x8x512xf32>
    tpu.vector_store %arg5[%c0_6, %c0_7, %c0_8], %12 {strides = array<i32>} : memref<1x8x512xf32, #tpu.memory_space<vmem>>, vector<1x8x512xf32>,
    return
  }
  func.func @transform_0(%arg0: i32, %arg1: i32) -> (i32, i32, i32) {
    %c0_i32 = arith.constant 0 : i32
    %c0_i32_0 = arith.constant 0 : i32
    return %arg0, %c0_i32, %arg1 : i32, i32, i32
  }
  func.func @transform_1(%arg0: i32, %arg1: i32) -> (i32, i32) {
    %c0_i32 = arith.constant 0 : i32
    %c0_i32_0 = arith.constant 0 : i32
    %c0_i32_1 = arith.constant 0 : i32
    return %c0_i32, %c0_i32_0 : i32, i32
  }
  func.func @transform_2(%arg0: i32, %arg1: i32) -> (i32, i32) {
    %c0_i32 = arith.constant 0 : i32
    %c0_i32_0 = arith.constant 0 : i32
    %c0_i32_1 = arith.constant 0 : i32
    return %c0_i32, %c0_i32_0 : i32, i32
  }
  func.func @transform_3(%arg0: i32, %arg1: i32) -> (i32, i32, i32) {
    %c0_i32 = arith.constant 0 : i32
    %c0_i32_0 = arith.constant 0 : i32
    return %arg0, %c0_i32, %arg1 : i32, i32, i32
  }
}

module attributes {stable_mosaic.version = 11 : i64} {
  func.func @_conv_stats_kernel(%arg0: i32, %arg1: i32, %arg2: memref<1x16x512xf32, #tpu.memory_space<vmem>>, %arg3: memref<1x8x16xf32, #tpu.memory_space<vmem>>, %arg4: memref<1x8x512xf32, #tpu.memory_space<vmem>>, %arg5: memref<1x1x8x1xf32, #tpu.memory_space<vmem>>, %arg6: memref<1x1x8x1xf32, #tpu.memory_space<vmem>>) attributes {dimension_semantics = [#tpu.dimension_semantics<parallel>, #tpu.dimension_semantics<parallel>], iteration_bounds = array<i64: 4, 1>, scalar_prefetch = 0 : i64, scratch_operands = 0 : i64, tpu.core_type = #tpu.core_type<tc>, window_params = [{transform_indices = @transform_0, window_bounds = array<i64: 1, 16, 512>}, {transform_indices = @transform_1, window_bounds = array<i64: 1, 8, 16>}, {transform_indices = @transform_2, window_bounds = array<i64: 1, 8, 512>}, {transform_indices = @transform_3, window_bounds = array<i64: 1, 1, 8, 1>}, {transform_indices = @transform_4, window_bounds = array<i64: 1, 1, 8, 1>}]} {
    %c0 = arith.constant 0 : index
    %c0_0 = arith.constant 0 : index
    %c0_1 = arith.constant 0 : index
    %0 = vector.load %arg3[%c0, %c0_0, %c0_1] : memref<1x8x16xf32, #tpu.memory_space<vmem>>, vector<1x8x16xf32>
    %1 = vector.shape_cast %0 : vector<1x8x16xf32> to vector<8x16xf32>
    %c0_2 = arith.constant 0 : index
    %c0_3 = arith.constant 0 : index
    %c0_4 = arith.constant 0 : index
    %2 = vector.load %arg2[%c0_2, %c0_3, %c0_4] : memref<1x16x512xf32, #tpu.memory_space<vmem>>, vector<1x16x512xf32>
    %3 = vector.shape_cast %2 : vector<1x16x512xf32> to vector<16x512xf32>
    %cst = arith.constant dense<0.000000e+00> : vector<8x512xf32>
    %4 = tpu.matmul %1, %3, %cst {dimension_numbers = #tpu.dot_dimension_numbers<[1], [0], [0], [1], [0, 0, 1, 1], [], []>} : vector<8x16xf32>, vector<16x512xf32>, vector<8x512xf32> -> vector<8x512xf32>
    %c0_5 = arith.constant 0 : index
    %c0_6 = arith.constant 0 : index
    %c0_7 = arith.constant 0 : index
    %5 = vector.load %arg4[%c0_5, %c0_6, %c0_7] : memref<1x8x512xf32, #tpu.memory_space<vmem>>, vector<1x8x512xf32>
    %6 = vector.shape_cast %5 : vector<1x8x512xf32> to vector<8x512xf32>
    %7 = vector.shape_cast %4 : vector<8x512xf32> to vector<1x8x512xf32>
    tpu.vector_store %arg4[%c0_5, %c0_6, %c0_7], %7 {strides = array<i32>} : memref<1x8x512xf32, #tpu.memory_space<vmem>>, vector<1x8x512xf32>,
    %cst_8 = arith.constant dense<0.000000e+00> : vector<8xf32>
    %8 = vector.multi_reduction <add>, %4, %cst_8 [1] : vector<8x512xf32> to vector<8xf32>
    %9 = vector.shape_cast %8 : vector<8xf32> to vector<8x1xf32>
    %c0_9 = arith.constant 0 : index
    %c0_10 = arith.constant 0 : index
    %c0_11 = arith.constant 0 : index
    %c0_12 = arith.constant 0 : index
    %10 = vector.load %arg5[%c0_9, %c0_10, %c0_11, %c0_12] : memref<1x1x8x1xf32, #tpu.memory_space<vmem>>, vector<1x1x8x1xf32>
    %11 = vector.shape_cast %10 : vector<1x1x8x1xf32> to vector<8x1xf32>
    %12 = vector.shape_cast %9 : vector<8x1xf32> to vector<1x1x8x1xf32>
    tpu.vector_store %arg5[%c0_9, %c0_10, %c0_11, %c0_12], %12 {strides = array<i32>} : memref<1x1x8x1xf32, #tpu.memory_space<vmem>>, vector<1x1x8x1xf32>,
    %13 = arith.mulf %4, %4 : vector<8x512xf32>
    %cst_13 = arith.constant dense<0.000000e+00> : vector<8xf32>
    %14 = vector.multi_reduction <add>, %13, %cst_13 [1] : vector<8x512xf32> to vector<8xf32>
    %15 = vector.shape_cast %14 : vector<8xf32> to vector<8x1xf32>
    %c0_14 = arith.constant 0 : index
    %c0_15 = arith.constant 0 : index
    %c0_16 = arith.constant 0 : index
    %c0_17 = arith.constant 0 : index
    %16 = vector.load %arg6[%c0_14, %c0_15, %c0_16, %c0_17] : memref<1x1x8x1xf32, #tpu.memory_space<vmem>>, vector<1x1x8x1xf32>
    %17 = vector.shape_cast %16 : vector<1x1x8x1xf32> to vector<8x1xf32>
    %18 = vector.shape_cast %15 : vector<8x1xf32> to vector<1x1x8x1xf32>
    tpu.vector_store %arg6[%c0_14, %c0_15, %c0_16, %c0_17], %18 {strides = array<i32>} : memref<1x1x8x1xf32, #tpu.memory_space<vmem>>, vector<1x1x8x1xf32>,
    return
  }
  func.func @transform_0(%arg0: i32, %arg1: i32) -> (i32, i32, i32) {
    %c0_i32 = arith.constant 0 : i32
    %c0_i32_0 = arith.constant 0 : i32
    return %arg0, %c0_i32, %arg1 : i32, i32, i32
  }
  func.func @transform_1(%arg0: i32, %arg1: i32) -> (i32, i32, i32) {
    %c0_i32 = arith.constant 0 : i32
    %c0_i32_0 = arith.constant 0 : i32
    %c0_i32_1 = arith.constant 0 : i32
    return %arg0, %c0_i32, %c0_i32_0 : i32, i32, i32
  }
  func.func @transform_2(%arg0: i32, %arg1: i32) -> (i32, i32, i32) {
    %c0_i32 = arith.constant 0 : i32
    %c0_i32_0 = arith.constant 0 : i32
    return %arg0, %c0_i32, %arg1 : i32, i32, i32
  }
  func.func @transform_3(%arg0: i32, %arg1: i32) -> (i32, i32, i32, i32) {
    %c0_i32 = arith.constant 0 : i32
    %c0_i32_0 = arith.constant 0 : i32
    %c0_i32_1 = arith.constant 0 : i32
    return %arg0, %arg1, %c0_i32, %c0_i32_0 : i32, i32, i32, i32
  }
  func.func @transform_4(%arg0: i32, %arg1: i32) -> (i32, i32, i32, i32) {
    %c0_i32 = arith.constant 0 : i32
    %c0_i32_0 = arith.constant 0 : i32
    %c0_i32_1 = arith.constant 0 : i32
    return %arg0, %arg1, %c0_i32, %c0_i32_0 : i32, i32, i32, i32
  }
}

</mosaic_0001>

<bundles_post_ra>
// kernel: squeeze.4
= control target key start
LH: loop header
LB: loop body
LE: loop exit
PB: predicated region body
PF: predicated region fallthrough
CT: control target
= control target key end

     0   :  { %vm79_vm0 = vcmask 1047556   ;;  %s579_s14 = smov 112   ;;  %s580_s27 = smov 96   ;;  %vm3_vm1 = vcmask 130048   ;;  %s1156_s0 = inlined_call_operand.vmem [shape: f32[1,8,512], index: 0, kind: input, shape index: {}]   ;;  %s1157_s1 = inlined_call_operand.vmem [shape: f32[8,2,16,16], index: 1, kind: output, shape index: {}]  }
   0x1   :  { %v76_v0 = vld [vmem:[%s1156_s0] ss:$8 sm:$0xf]   ;;  %v467_v1 = vld [vmem:[%s1156_s0 - $0x1f] ss:$8 sm:$0xf0]  }
   0x2   :  { %v80_v2 = vsel %vm79_vm0, %v467_v1, %v76_v0  ;;  %v474_v3 = vld [vmem:[%s1156_s0 + $0x4] ss:$8 sm:$0xf]   ;;  %v475_v4 = vld [vmem:[%s1156_s0 - $0x1b] ss:$8 sm:$0xf0]  }
   0x3   :  { %81 = vrot.lane.b32.xlu0 %v80_v2, %s579_s14  ;;  %v106_v5 = vsel %vm79_vm0, %v475_v4, %v474_v3  ;;  %v470_v6 = vld [vmem:[%s1156_s0 + $0x2] ss:$8 sm:$0xf]   ;;  %v471_v7 = vld [vmem:[%s1156_s0 - $0x1d] ss:$8 sm:$0xf0]  }
   0x4   :  { %107 = vrot.lane.b32.xlu1 %v106_v5, %s579_s14  ;;  %v478_v8 = vld [vmem:[%s1156_s0 + $0x6] ss:$8 sm:$0xf]   ;;  %v479_v9 = vld [vmem:[%s1156_s0 - $0x19] ss:$8 sm:$0xf0]   ;;  %v93_v10 = vsel %vm79_vm0, %v471_v7, %v470_v6 }
   0x5   :  { %v127_v11 = vld [vmem:[%s1156_s0] ss:$8 sm:$0xf]   ;;  %v119_v12 = vsel %vm79_vm0, %v479_v9, %v478_v8  ;;  %v482_v13 = vld [vmem:[%s1156_s0 - $0x1f] ss:$8 sm:$0xf0]  }
   0x6   :  { %v131_v14 = vsel %vm79_vm0, %v482_v13, %v127_v11  ;;  %v489_v15 = vld [vmem:[%s1156_s0 + $0x4] ss:$8 sm:$0xf]   ;;  %v490_v16 = vld [vmem:[%s1156_s0 - $0x1b] ss:$8 sm:$0xf0]  }
   0x7   :  { %132 = vrot.lane.b32.xlu2 %v131_v14, %s580_s27  ;;  %v485_v17 = vld [vmem:[%s1156_s0 + $0x2] ss:$8 sm:$0xf]   ;;  %v486_v18 = vld [vmem:[%s1156_s0 - $0x1d] ss:$8 sm:$0xf0]   ;;  %v157_v21 = vsel %vm79_vm0, %v490_v16, %v489_v15 }
   0x8   :  { %v493_v19 = vld [vmem:[%s1156_s0 + $0x6] ss:$8 sm:$0xf]   ;;  %v494_v20 = vld [vmem:[%s1156_s0 - $0x19] ss:$8 sm:$0xf0]   ;;  %v144_v22 = vsel %vm79_vm0, %v486_v18, %v485_v17 }
   0x9   :  { %v170_v23 = vsel %vm79_vm0, %v494_v20, %v493_v19  ;;  %v500_v24 = vld [vmem:[%s1156_s0 + $0x2] ss:$8 sm:$0xf]   ;;  %v501_v25 = vld [vmem:[%s1156_s0 - $0x1d] ss:$8 sm:$0xf0]  }
   0xa   :  { %v178_v26 = vld [vmem:[%s1156_s0] ss:$8 sm:$0xf]   ;;  %v497_v27 = vld [vmem:[%s1156_s0 - $0x1f] ss:$8 sm:$0xf0]   ;;  %v195_v30 = vsel %vm79_vm0, %v501_v25, %v500_v24 }
   0xb   :  { %94 = vrot.lane.b32.xlu0 %v93_v10, %s579_s14  ;;  %v504_v28 = vld [vmem:[%s1156_s0 + $0x4] ss:$8 sm:$0xf]   ;;  %v505_v29 = vld [vmem:[%s1156_s0 - $0x1b] ss:$8 sm:$0xf0]   ;;  %v182_v31 = vsel %vm79_vm0, %v497_v27, %v178_v26 }
   0xc   :  { %120 = vrot.lane.b32.xlu1 %v119_v12, %s579_s14  ;;  %v208_v32 = vsel %vm79_vm0, %v505_v29, %v504_v28  ;;  %s581_s23 = smov 80   ;;  %v229_v33 = vld [vmem:[%s1156_s0] ss:$8 sm:$0xf]   ;;  %s582_s11 = smov 64  }
   0xd   :  { %v512_v34 = vld [vmem:[%s1156_s0 - $0x1f] ss:$8 sm:$0xf0]   ;;  %v508_v35 = vld [vmem:[%s1156_s0 + $0x6] ss:$8 sm:$0xf]  }
   0xe   :  { %v509_v36 = vld [vmem:[%s1156_s0 - $0x19] ss:$8 sm:$0xf0]   ;;  %v382_v37 = vld [vmem:[%s1156_s0] ss:$8 sm:$0xf]   ;;  %v233_v42 = vsel %vm79_vm0, %v512_v34, %v229_v33 }
   0xf   :  { %145 = vrot.lane.b32.xlu2 %v144_v22, %s580_s27  ;;  %v557_v38 = vld [vmem:[%s1156_s0 - $0x1f] ss:$8 sm:$0xf0]   ;;  %v515_v39 = vld [vmem:[%s1156_s0 + $0x2] ss:$8 sm:$0xf]   ;;  %v221_v43 = vsel %vm79_vm0, %v509_v36, %v508_v35 }
  0x10   :  { %v516_v40 = vld [vmem:[%s1156_s0 - $0x1d] ss:$8 sm:$0xf0]   ;;  %v386_v41 = vsel %vm79_vm0, %v557_v38, %v382_v37  ;;  %v523_v45 = vld [vmem:[%s1156_s0 + $0x6] ss:$8 sm:$0xf]  }
  0x11   :  { %v246_v44 = vsel %vm79_vm0, %v516_v40, %v515_v39  ;;  %v524_v46 = vld [vmem:[%s1156_s0 - $0x19] ss:$8 sm:$0xf0]   ;;  %v519_v47 = vld [vmem:[%s1156_s0 + $0x4] ss:$8 sm:$0xf]  }
  0x12   :  { %v520_v48 = vld [vmem:[%s1156_s0 - $0x1b] ss:$8 sm:$0xf0]   ;;  %v560_v49 = vld [vmem:[%s1156_s0 + $0x2] ss:$8 sm:$0xf]   ;;  %v272_v57 = vsel %vm79_vm0, %v524_v46, %v523_v45 }
  0x13   :  { %158 = vrot.lane.b32.xlu0 %v157_v21, %s580_s27  ;;  %v561_v50 = vld [vmem:[%s1156_s0 - $0x1d] ss:$8 sm:$0xf0]   ;;  %v568_v52 = vld [vmem:[%s1156_s0 + $0x6] ss:$8 sm:$0xf]   ;;  %v259_v58 = vsel %vm79_vm0, %v520_v48, %v519_v47 }
  0x14   :  { %171 = vrot.lane.b32.xlu1 %v170_v23, %s580_s27  ;;  %v399_v51 = vsel %vm79_vm0, %v561_v50, %v560_v49  ;;  %v569_v53 = vld [vmem:[%s1156_s0 - $0x19] ss:$8 sm:$0xf0]   ;;  %v280_v54 = vld [vmem:[%s1156_s0] ss:$8 sm:$0xf]  }
  0x15   :  { %v527_v55 = vld [vmem:[%s1156_s0 - $0x1f] ss:$8 sm:$0xf0]   ;;  %v425_v56 = vsel %vm79_vm0, %v569_v53, %v568_v52  ;;  %v534_v60 = vld [vmem:[%s1156_s0 + $0x4] ss:$8 sm:$0xf]  }
  0x16   :  { %v284_v59 = vsel %vm79_vm0, %v527_v55, %v280_v54  ;;  %v535_v61 = vld [vmem:[%s1156_s0 - $0x1b] ss:$8 sm:$0xf0]   ;;  %v530_v62 = vld [vmem:[%s1156_s0 + $0x2] ss:$8 sm:$0xf]  }
  0x17   :  { %183 = vrot.lane.b32.xlu2 %v182_v31, %s581_s23  ;;  %v531_v63 = vld [vmem:[%s1156_s0 - $0x1d] ss:$8 sm:$0xf0]   ;;  %v553_v0 = vld [vmem:[%s1156_s0 + $0x6] ss:$8 sm:$0xf]   ;;  %v310_v8 = vsel %vm79_vm0, %v535_v61, %v534_v60 }
  0x18   :  { %v554_v1 = vld [vmem:[%s1156_s0 - $0x19] ss:$8 sm:$0xf0]   ;;  %v564_v3 = vld [vmem:[%s1156_s0 + $0x4] ss:$8 sm:$0xf]   ;;  %v297_v9 = vsel %vm79_vm0, %v531_v63, %v530_v62 }
  0x19   :  { %v374_v2 = vsel %vm79_vm0, %v554_v1, %v553_v0  ;;  %v565_v4 = vld [vmem:[%s1156_s0 - $0x1b] ss:$8 sm:$0xf0]   ;;  %v538_v5 = vld [vmem:[%s1156_s0 + $0x6] ss:$8 sm:$0xf]  }
  0x1a   :  { %v539_v6 = vld [vmem:[%s1156_s0 - $0x19] ss:$8 sm:$0xf0]   ;;  %v412_v7 = vsel %vm79_vm0, %v565_v4, %v564_v3  ;;  %v545_v11 = vld [vmem:[%s1156_s0 + $0x2] ss:$8 sm:$0xf]  }
  0x1b   :  { %196 = vrot.lane.b32.xlu0 %v195_v30, %s581_s23  ;;  %v323_v10 = vsel %vm79_vm0, %v539_v6, %v538_v5  ;;  %v546_v12 = vld [vmem:[%s1156_s0 - $0x1d] ss:$8 sm:$0xf0]   ;;  %v331_v13 = vld [vmem:[%s1156_s0] ss:$8 sm:$0xf]  }
  0x1c   :  { %209 = vrot.lane.b32.xlu1 %v208_v32, %s581_s23  ;;  %v542_v14 = vld [vmem:[%s1156_s0 - $0x1f] ss:$8 sm:$0xf0]   ;;  %v549_v15 = vld [vmem:[%s1156_s0 + $0x4] ss:$8 sm:$0xf]   ;;  %v348_v17 = vsel %vm79_vm0, %v546_v12, %v545_v11 }
  0x1d   :  { %v550_v16 = vld [vmem:[%s1156_s0 - $0x1b] ss:$8 sm:$0xf0]   ;;  %v335_v18 = vsel %vm79_vm0, %v542_v14, %v331_v13  ;;  %s584_s7 = smov 32   ;;  %s585_s8 = smov 16  }
  0x1e   :  { %v361_v19 = vsel %vm79_vm0, %v550_v16, %v549_v15  ;;  %v2_v40 = vld [vmem:[%s1156_s0] sm:$0xff]   ;;  %v440_v48 = vld [vmem:[%s1156_s0 + $0x8] sm:$0xff]   ;;  %v449_v50 = vld [vmem:[%s1156_s0 + $0x10] sm:$0xff]  }
  0x1f   :  { %222 = vrot.lane.b32.xlu2 %v221_v43, %s581_s23  ;;  %4 = vst.msk [vmem:[%s1157_s1] sm:$0x1] %vm3_vm1, %v2_v40  }
  0x20   :  { %433 = vst.msk [vmem:[%s1157_s1 + $0x1f] sm:$0x2] %vm3_vm1, %v2_v40  }
  0x21   :  { %434 = vst.msk [vmem:[%s1157_s1 + $0x3e] sm:$0x4] %vm3_vm1, %v2_v40  }
  0x22   :  { %435 = vst.msk [vmem:[%s1157_s1 + $0x5d] sm:$0x8] %vm3_vm1, %v2_v40  }
  0x23   :  { %234 = vrot.lane.b32.xlu0 %v233_v42, %s582_s11  ;;  %436 = vst.msk [vmem:[%s1157_s1 + $0x7c] sm:$0x10] %vm3_vm1, %v2_v40  }
  0x24   :  { %247 = vrot.lane.b32.xlu1 %v246_v44, %s582_s11  ;;  %437 = vst.msk [vmem:[%s1157_s1 + $0x9b] sm:$0x20] %vm3_vm1, %v2_v40  }
  0x25   :  { %438 = vst.msk [vmem:[%s1157_s1 + $0xba] sm:$0x40] %vm3_vm1, %v2_v40  }
  0x26   :  { %439 = vst.msk [vmem:[%s1157_s1 + $0xd9] sm:$0x80] %vm3_vm1, %v2_v40  }
  0x27   :  { %260 = vrot.lane.b32.xlu2 %v259_v58, %s582_s11  ;;  %441 = vst.msk [vmem:[%s1157_s1 + $0x8] sm:$0x1] %vm3_vm1, %v440_v48  }
  0x28   :  { %442 = vst.msk [vmem:[%s1157_s1 + $0x27] sm:$0x2] %vm3_vm1, %v440_v48  }
  0x29   :  { %443 = vst.msk [vmem:[%s1157_s1 + $0x46] sm:$0x4] %vm3_vm1, %v440_v48  }
  0x2a   :  { %444 = vst.msk [vmem:[%s1157_s1 + $0x65] sm:$0x8] %vm3_vm1, %v440_v48  }
  0x2b   :  { %273 = vrot.lane.b32.xlu0 %v272_v57, %s582_s11  ;;  %s583_s11 = smov 48   ;;  %445 = vst.msk [vmem:[%s1157_s1 + $0x84] sm:$0x10] %vm3_vm1, %v440_v48  }
  0x2c   :  { %285 = vrot.lane.b32.xlu1 %v284_v59, %s583_s11  ;;  %446 = vst.msk [vmem:[%s1157_s1 + $0xa3] sm:$0x20] %vm3_vm1, %v440_v48  }
  0x2d   :  { %447 = vst.msk [vmem:[%s1157_s1 + $0xc2] sm:$0x40] %vm3_vm1, %v440_v48  }
  0x2e   :  { %448 = vst.msk [vmem:[%s1157_s1 + $0xe1] sm:$0x80] %vm3_vm1, %v440_v48  }
  0x2f   :  { %298 = vrot.lane.b32.xlu2 %v297_v9, %s583_s11  ;;  %450 = vst.msk [vmem:[%s1157_s1 + $0x10] sm:$0x1] %vm3_vm1, %v449_v50  }
  0x30   :  { %451 = vst.msk [vmem:[%s1157_s1 + $0x2f] sm:$0x2] %vm3_vm1, %v449_v50  }
  0x31   :  { %452 = vst.msk [vmem:[%s1157_s1 + $0x4e] sm:$0x4] %vm3_vm1, %v449_v50  }
  0x32   :  { %453 = vst.msk [vmem:[%s1157_s1 + $0x6d] sm:$0x8] %vm3_vm1, %v449_v50  }
  0x33   :  { %311 = vrot.lane.b32.xlu0 %v310_v8, %s583_s11  ;;  %454 = vst.msk [vmem:[%s1157_s1 + $0x8c] sm:$0x10] %vm3_vm1, %v449_v50  }
  0x34   :  { %324 = vrot.lane.b32.xlu1 %v323_v10, %s583_s11  ;;  %455 = vst.msk [vmem:[%s1157_s1 + $0xab] sm:$0x20] %vm3_vm1, %v449_v50  }
  0x35   :  { %456 = vst.msk [vmem:[%s1157_s1 + $0xca] sm:$0x40] %vm3_vm1, %v449_v50  }
  0x36   :  { %457 = vst.msk [vmem:[%s1157_s1 + $0xe9] sm:$0x80] %vm3_vm1, %v449_v50  }
  0x37   :  { %336 = vrot.lane.b32.xlu2 %v335_v18, %s584_s7 }
  0x3b   :  { %349 = vrot.lane.b32.xlu0 %v348_v17, %s584_s7 }
  0x3c   :  { %362 = vrot.lane.b32.xlu1 %v361_v19, %s584_s7 }
  0x3f   :  { %375 = vrot.lane.b32.xlu2 %v374_v2, %s584_s7 }
  0x43   :  { %387 = vrot.lane.b32.xlu0 %v386_v41, %s585_s8 }
  0x44   :  { %400 = vrot.lane.b32.xlu1 %v399_v51, %s585_s8  ;;  %v458_v51 = vld [vmem:[%s1156_s0 + $0x18] sm:$0xff]  }
  0x45   :  { %459 = vst.msk [vmem:[%s1157_s1 + $0x18] sm:$0x1] %vm3_vm1, %v458_v51  }
  0x46   :  { %460 = vst.msk [vmem:[%s1157_s1 + $0x37] sm:$0x2] %vm3_vm1, %v458_v51  }
  0x47   :  { %413 = vrot.lane.b32.xlu2 %v412_v7, %s585_s8  ;;  %461 = vst.msk [vmem:[%s1157_s1 + $0x56] sm:$0x4] %vm3_vm1, %v458_v51  }
  0x48   :  { %462 = vst.msk [vmem:[%s1157_s1 + $0x75] sm:$0x8] %vm3_vm1, %v458_v51  }
  0x49   :  { %463 = vst.msk [vmem:[%s1157_s1 + $0x94] sm:$0x10] %vm3_vm1, %v458_v51  }
  0x4a   :  { %464 = vst.msk [vmem:[%s1157_s1 + $0xb3] sm:$0x20] %vm3_vm1, %v458_v51  }
  0x4b   :  { %426 = vrot.lane.b32.xlu0 %v425_v56, %s585_s8  ;;  %465 = vst.msk [vmem:[%s1157_s1 + $0xd2] sm:$0x40] %vm3_vm1, %v458_v51  }
  0x4c   :  { %466 = vst.msk [vmem:[%s1157_s1 + $0xf1] sm:$0x80] %vm3_vm1, %v458_v51  }
  0x61   :  { %v133_v20 = vpop.permute.xlu2 %132  }
  0x62   :  { %483 = vst.msk [vmem:[%s1157_s1 + $0x2] ss:$8 sm:$0xf] %vm3_vm1, %v133_v20  }
  0x63   :  { %484 = vst.msk [vmem:[%s1157_s1 + $0x2] ss:$8 sm:$0xf0] %vm3_vm1, %v133_v20  }
  0x69   :  { %v146_v21 = vpop.permute.xlu2 %145  }
  0x6a   :  { %487 = vst.msk [vmem:[%s1157_s1 + $0x42] ss:$8 sm:$0xf] %vm3_vm1, %v146_v21  }
  0x6b   :  { %488 = vst.msk [vmem:[%s1157_s1 + $0x42] ss:$8 sm:$0xf0] %vm3_vm1, %v146_v21  }
  0x71   :  { %v184_v23 = vpop.permute.xlu2 %183  }
  0x72   :  { %498 = vst.msk [vmem:[%s1157_s1 + $0x3] ss:$8 sm:$0xf] %vm3_vm1, %v184_v23  }
  0x73   :  { %499 = vst.msk [vmem:[%s1157_s1 + $0x3] ss:$8 sm:$0xf0] %vm3_vm1, %v184_v23  }
  0x75   :  { %v82_v22 = vpop.permute.xlu0 %81  }
  0x76   :  { %468 = vst.msk [vmem:[%s1157_s1 + $0x1] ss:$8 sm:$0xf] %vm3_vm1, %v82_v22   ;;  %v108_v24 = vpop.permute.xlu1 %107  }
  0x77   :  { %469 = vst.msk [vmem:[%s1157_s1 + $0x1] ss:$8 sm:$0xf0] %vm3_vm1, %v82_v22  }
  0x78   :  { %476 = vst.msk [vmem:[%s1157_s1 + $0x81] ss:$8 sm:$0xf] %vm3_vm1, %v108_v24  }
  0x79   :  { %477 = vst.msk [vmem:[%s1157_s1 + $0x81] ss:$8 sm:$0xf0] %vm3_vm1, %v108_v24   ;;  %v223_v26 = vpop.permute.xlu2 %222  }
  0x7a   :  { %510 = vst.msk [vmem:[%s1157_s1 + $0xc3] ss:$8 sm:$0xf] %vm3_vm1, %v223_v26  }
  0x7b   :  { %511 = vst.msk [vmem:[%s1157_s1 + $0xc3] ss:$8 sm:$0xf0] %vm3_vm1, %v223_v26  }
  0x7d   :  { %v95_v25 = vpop.permute.xlu0 %94  }
  0x7e   :  { %472 = vst.msk [vmem:[%s1157_s1 + $0x41] ss:$8 sm:$0xf] %vm3_vm1, %v95_v25   ;;  %v121_v27 = vpop.permute.xlu1 %120  }
  0x7f   :  { %473 = vst.msk [vmem:[%s1157_s1 + $0x41] ss:$8 sm:$0xf0] %vm3_vm1, %v95_v25  }
  0x80   :  { %480 = vst.msk [vmem:[%s1157_s1 + $0xc1] ss:$8 sm:$0xf] %vm3_vm1, %v121_v27  }
  0x81   :  { %481 = vst.msk [vmem:[%s1157_s1 + $0xc1] ss:$8 sm:$0xf0] %vm3_vm1, %v121_v27   ;;  %v261_v29 = vpop.permute.xlu2 %260  }
  0x82   :  { %521 = vst.msk [vmem:[%s1157_s1 + $0x84] ss:$8 sm:$0xf] %vm3_vm1, %v261_v29  }
  0x83   :  { %522 = vst.msk [vmem:[%s1157_s1 + $0x84] ss:$8 sm:$0xf0] %vm3_vm1, %v261_v29  }
  0x85   :  { %v159_v28 = vpop.permute.xlu0 %158  }
  0x86   :  { %491 = vst.msk [vmem:[%s1157_s1 + $0x82] ss:$8 sm:$0xf] %vm3_vm1, %v159_v28   ;;  %v172_v30 = vpop.permute.xlu1 %171  }
  0x87   :  { %492 = vst.msk [vmem:[%s1157_s1 + $0x82] ss:$8 sm:$0xf0] %vm3_vm1, %v159_v28  }
  0x88   :  { %495 = vst.msk [vmem:[%s1157_s1 + $0xc2] ss:$8 sm:$0xf] %vm3_vm1, %v172_v30  }
  0x89   :  { %496 = vst.msk [vmem:[%s1157_s1 + $0xc2] ss:$8 sm:$0xf0] %vm3_vm1, %v172_v30   ;;  %v299_v32 = vpop.permute.xlu2 %298  }
  0x8a   :  { %532 = vst.msk [vmem:[%s1157_s1 + $0x45] ss:$8 sm:$0xf] %vm3_vm1, %v299_v32  }
  0x8b   :  { %533 = vst.msk [vmem:[%s1157_s1 + $0x45] ss:$8 sm:$0xf0] %vm3_vm1, %v299_v32  }
  0x8d   :  { %v197_v31 = vpop.permute.xlu0 %196  }
  0x8e   :  { %502 = vst.msk [vmem:[%s1157_s1 + $0x43] ss:$8 sm:$0xf] %vm3_vm1, %v197_v31   ;;  %v210_v33 = vpop.permute.xlu1 %209  }
  0x8f   :  { %503 = vst.msk [vmem:[%s1157_s1 + $0x43] ss:$8 sm:$0xf0] %vm3_vm1, %v197_v31  }
  0x90   :  { %506 = vst.msk [vmem:[%s1157_s1 + $0x83] ss:$8 sm:$0xf] %vm3_vm1, %v210_v33  }
  0x91   :  { %507 = vst.msk [vmem:[%s1157_s1 + $0x83] ss:$8 sm:$0xf0] %vm3_vm1, %v210_v33   ;;  %v337_v35 = vpop.permute.xlu2 %336  }
  0x92   :  { %543 = vst.msk [vmem:[%s1157_s1 + $0x6] ss:$8 sm:$0xf] %vm3_vm1, %v337_v35  }
  0x93   :  { %544 = vst.msk [vmem:[%s1157_s1 + $0x6] ss:$8 sm:$0xf0] %vm3_vm1, %v337_v35  }
  0x95   :  { %v235_v34 = vpop.permute.xlu0 %234  }
  0x96   :  { %513 = vst.msk [vmem:[%s1157_s1 + $0x4] ss:$8 sm:$0xf] %vm3_vm1, %v235_v34   ;;  %v248_v36 = vpop.permute.xlu1 %247  }
  0x97   :  { %514 = vst.msk [vmem:[%s1157_s1 + $0x4] ss:$8 sm:$0xf0] %vm3_vm1, %v235_v34  }
  0x98   :  { %517 = vst.msk [vmem:[%s1157_s1 + $0x44] ss:$8 sm:$0xf] %vm3_vm1, %v248_v36  }
  0x99   :  { %518 = vst.msk [vmem:[%s1157_s1 + $0x44] ss:$8 sm:$0xf0] %vm3_vm1, %v248_v36   ;;  %v376_v38 = vpop.permute.xlu2 %375  }
  0x9a   :  { %555 = vst.msk [vmem:[%s1157_s1 + $0xc6] ss:$8 sm:$0xf] %vm3_vm1, %v376_v38  }
  0x9b   :  { %556 = vst.msk [vmem:[%s1157_s1 + $0xc6] ss:$8 sm:$0xf0] %vm3_vm1, %v376_v38  }
  0x9d   :  { %v274_v37 = vpop.permute.xlu0 %273  }
  0x9e   :  { %525 = vst.msk [vmem:[%s1157_s1 + $0xc4] ss:$8 sm:$0xf] %vm3_vm1, %v274_v37   ;;  %v286_v39 = vpop.permute.xlu1 %285  }
  0x9f   :  { %526 = vst.msk [vmem:[%s1157_s1 + $0xc4] ss:$8 sm:$0xf0] %vm3_vm1, %v274_v37  }
  0xa0   :  { %528 = vst.msk [vmem:[%s1157_s1 + $0x5] ss:$8 sm:$0xf] %vm3_vm1, %v286_v39  }
  0xa1   :  { %529 = vst.msk [vmem:[%s1157_s1 + $0x5] ss:$8 sm:$0xf0] %vm3_vm1, %v286_v39   ;;  %v414_v42 = vpop.permute.xlu2 %413  }
  0xa2   :  { %566 = vst.msk [vmem:[%s1157_s1 + $0x87] ss:$8 sm:$0xf] %vm3_vm1, %v414_v42  }
  0xa3   :  { %567 = vst.msk [vmem:[%s1157_s1 + $0x87] ss:$8 sm:$0xf0] %vm3_vm1, %v414_v42  }
  0xa5   :  { %v312_v41 = vpop.permute.xlu0 %311  }
  0xa6   :  { %536 = vst.msk [vmem:[%s1157_s1 + $0x85] ss:$8 sm:$0xf] %vm3_vm1, %v312_v41   ;;  %v325_v43 = vpop.permute.xlu1 %324  }
  0xa7   :  { %537 = vst.msk [vmem:[%s1157_s1 + $0x85] ss:$8 sm:$0xf0] %vm3_vm1, %v312_v41  }
  0xa8   :  { %540 = vst.msk [vmem:[%s1157_s1 + $0xc5] ss:$8 sm:$0xf] %vm3_vm1, %v325_v43  }
  0xa9   :  { %541 = vst.msk [vmem:[%s1157_s1 + $0xc5] ss:$8 sm:$0xf0] %vm3_vm1, %v325_v43  }
  0xad   :  { %v350_v44 = vpop.permute.xlu0 %349  }
  0xae   :  { %547 = vst.msk [vmem:[%s1157_s1 + $0x46] ss:$8 sm:$0xf] %vm3_vm1, %v350_v44   ;;  %v363_v45 = vpop.permute.xlu1 %362  }
  0xaf   :  { %548 = vst.msk [vmem:[%s1157_s1 + $0x46] ss:$8 sm:$0xf0] %vm3_vm1, %v350_v44  }
  0xb0   :  { %551 = vst.msk [vmem:[%s1157_s1 + $0x86] ss:$8 sm:$0xf] %vm3_vm1, %v363_v45  }
  0xb1   :  { %552 = vst.msk [vmem:[%s1157_s1 + $0x86] ss:$8 sm:$0xf0] %vm3_vm1, %v363_v45  }
  0xb5   :  { %v388_v46 = vpop.permute.xlu0 %387  }
  0xb6   :  { %558 = vst.msk [vmem:[%s1157_s1 + $0x7] ss:$8 sm:$0xf] %vm3_vm1, %v388_v46   ;;  %v401_v47 = vpop.permute.xlu1 %400  }
  0xb7   :  { %559 = vst.msk [vmem:[%s1157_s1 + $0x7] ss:$8 sm:$0xf0] %vm3_vm1, %v388_v46  }
  0xb8   :  { %562 = vst.msk [vmem:[%s1157_s1 + $0x47] ss:$8 sm:$0xf] %vm3_vm1, %v401_v47  }
  0xb9   :  { %563 = vst.msk [vmem:[%s1157_s1 + $0x47] ss:$8 sm:$0xf0] %vm3_vm1, %v401_v47  }
  0xbd   :  { %v427_v49 = vpop.permute.xlu0 %426  }
  0xbe   :  { %570 = vst.msk [vmem:[%s1157_s1 + $0xc7] ss:$8 sm:$0xf] %vm3_vm1, %v427_v49  }
  0xbf   :  { %571 = vst.msk [vmem:[%s1157_s1 + $0xc7] ss:$8 sm:$0xf0] %vm3_vm1, %v427_v49  }

</bundles_post_ra>
